<compile_context>
chip_gen: v6e
topology: v6e:2x2x1
jax: 0.10.0
libtpu: 0.0.40
codegen_flags: <defaults>
</compile_context>

<pallas_src>
import numpy as np

import jax
import jax.numpy as jnp
from jax.experimental import pallas as pl
from jax.experimental.pallas import tpu as pltpu


def _round_up(x, m):
    return ((x + m - 1) // m) * m


def _pool_matrix(H, W, OH, OW, k, s):
    """Constant (H*W, OH*OW) 0/1 matrix; column (oh, ow) selects its k x k window."""
    h = np.arange(H)[:, None]
    oh = np.arange(OH)[None, :]
    hit_h = (h >= oh * s) & (h < oh * s + k)                 # (H, OH)
    w = np.arange(W)[:, None]
    ow = np.arange(OW)[None, :]
    hit_w = (w >= ow * s) & (w < ow * s + k)                 # (W, OW)
    P = hit_h[:, None, :, None] & hit_w[None, :, None, :]    # (H, W, OH, OW)
    return jnp.asarray(P.reshape(H * W, OH * OW).astype(np.float32))


def _subsample_kernel(x_ref, p_ref, coef_ref, bias_ref, o_ref):
    # (tb, H*W) @ (H*W, OH*OW): the strided window-sum runs on the MXU.
    pooled = jnp.dot(x_ref[...], p_ref[...], preferred_element_type=jnp.float32)
    # coef already contains the 1/(k*k) averaging factor; lane-broadcast affine.
    o_ref[...] = pooled * coef_ref[...] + bias_ref[...]


def subsampling_forward(x, coef, bias, kernel_size, stride):
    """avg_pool2d(x, k, s) * coef[None,:,None,None] + bias[None,:,None,None].

    x: (N, C, H, W) float32 (NCHW, as in the PyTorch module).
    coef, bias: (C,) float32.
    """
    k, s = int(kernel_size), int(stride)
    x = x.astype(jnp.float32)
    N, C, H, W = x.shape
    OH = (H - k) // s + 1
    OW = (W - k) // s + 1
    S = OH * OW
    HW = H * W
    rows = N * C

    # TODO(synk): P is O(H*W * OH*OW); for large spatial dims switch to two
    # separable (OH,H)/(W,OW) pooling matmuls instead of one fused matrix.
    P = _pool_matrix(H, W, OH, OW, k, s)                      # (HW, S) constant

    xf = x.reshape(rows, HW)                                  # free reshape (contiguous NCHW)
    coef_rows = jnp.tile(coef.astype(jnp.float32) / float(k * k), N).reshape(rows, 1)
    bias_rows = jnp.tile(bias.astype(jnp.float32), N).reshape(rows, 1)

    # ---- row tiling: multiple of 8 sublanes; double-buffered in+out per block
    # kept around ~4 MiB, capped so tiny problems stay a single grid step.
    bytes_per_row = 4 * (HW + S) * 2
    tb = max(8, min(1024, (4 * 1024 * 1024) // max(bytes_per_row, 1)))
    tb = max(8, (tb // 8) * 8)
    tb = min(tb, _round_up(rows, 8))
    rows_p = _round_up(rows, tb)

    pad = rows_p - rows
    if pad:
        xf = jnp.pad(xf, ((0, pad), (0, 0)))
        coef_rows = jnp.pad(coef_rows, ((0, pad), (0, 0)))
        bias_rows = jnp.pad(bias_rows, ((0, pad), (0, 0)))

    grid = (rows_p // tb,)
    out = pl.pallas_call(
        _subsample_kernel,
        out_shape=jax.ShapeDtypeStruct((rows_p, S), jnp.float32),
        grid=grid,
        in_specs=[
            pl.BlockSpec((tb, HW), lambda i: (i, 0)),    # x rows (read once)
            pl.BlockSpec((HW, S), lambda i: (0, 0)),     # pooling matrix (resident)
            pl.BlockSpec((tb, 1), lambda i: (i, 0)),     # per-row coef (incl. 1/k^2)
            pl.BlockSpec((tb, 1), lambda i: (i, 0)),     # per-row bias
        ],
        out_specs=pl.BlockSpec((tb, S), lambda i: (i, 0)),
        compiler_params=pltpu.CompilerParams(
            dimension_semantics=("parallel",),
            vmem_limit_bytes=32 * 1024 * 1024,
        ),
    )(xf, P, coef_rows, bias_rows)

    return out[:rows].reshape(N, C, OH, OW)


if __name__ == "__main__":
    key = jax.random.PRNGKey(0)
    kx, kc, kb = jax.random.split(key, 3)

    N, C, H, W = 2, 4, 16, 16
    KERNEL_SIZE, STRIDE = 2, 2

    x = jax.random.normal(kx, (N, C, H, W), dtype=jnp.float32)
    # Module default init is coef=ones, bias=zeros; random values exercise the affine.
    coef = jax.random.normal(kc, (C,), dtype=jnp.float32)
    bias = jax.random.normal(kb, (C,), dtype=jnp.float32)

    fwd = jax.jit(subsampling_forward, static_argnums=(3, 4))
    out = jax.block_until_ready(fwd(x, coef, bias, KERNEL_SIZE, STRIDE))
    assert out.shape == (N, C, H // STRIDE, W // STRIDE), out.shape

    # Reference (plain XLA) check of the module semantics.
    pooled = jax.lax.reduce_window(
        x, 0.0, jax.lax.add,
        (1, 1, KERNEL_SIZE, KERNEL_SIZE), (1, 1, STRIDE, STRIDE), "VALID",
    ) / float(KERNEL_SIZE * KERNEL_SIZE)
    ref = pooled * coef.reshape(1, -1, 1, 1) + bias.reshape(1, -1, 1, 1)
    assert jnp.allclose(out, ref, atol=2e-5, rtol=1e-5), float(
        jnp.max(jnp.abs(out - ref)))

    print("KERNEL_OK")
</pallas_src>

<mosaic_0001>
module attributes {stable_mosaic.version = 11 : i64} {
  func.func @_subsample_kernel(%arg0: i32, %arg1: memref<8x256xf32, #tpu.memory_space<vmem>>, %arg2: memref<256x64xf32, #tpu.memory_space<vmem>>, %arg3: memref<8x1xf32, #tpu.memory_space<vmem>>, %arg4: memref<8x1xf32, #tpu.memory_space<vmem>>, %arg5: memref<8x64xf32, #tpu.memory_space<vmem>>) attributes {dimension_semantics = [#tpu.dimension_semantics<parallel>], iteration_bounds = array<i64: 1>, scalar_prefetch = 0 : i64, scratch_operands = 0 : i64, tpu.core_type = #tpu.core_type<tc>, window_params = [{transform_indices = @transform_0, window_bounds = array<i64: 8, 256>}, {pipeline_mode = #tpu.pipeline_mode<synchronous>, transform_indices = @transform_1, window_bounds = array<i64: 256, 64>}, {transform_indices = @transform_2, window_bounds = array<i64: 8, 1>}, {transform_indices = @transform_3, window_bounds = array<i64: 8, 1>}, {transform_indices = @transform_4, window_bounds = array<i64: 8, 64>}]} {
    %c0 = arith.constant 0 : index
    %c0_0 = arith.constant 0 : index
    %0 = vector.load %arg1[%c0, %c0_0] : memref<8x256xf32, #tpu.memory_space<vmem>>, vector<8x256xf32>
    %c0_1 = arith.constant 0 : index
    %c0_2 = arith.constant 0 : index
    %1 = vector.load %arg2[%c0_1, %c0_2] : memref<256x64xf32, #tpu.memory_space<vmem>>, vector<256x64xf32>
    %cst = arith.constant dense<0.000000e+00> : vector<8x64xf32>
    %2 = tpu.matmul %0, %1, %cst {dimension_numbers = #tpu.dot_dimension_numbers<[1], [0], [0], [1], [0, 0, 1, 1], [], []>} : vector<8x256xf32>, vector<256x64xf32>, vector<8x64xf32> -> vector<8x64xf32>
    %c0_3 = arith.constant 0 : index
    %c0_4 = arith.constant 0 : index
    %3 = vector.load %arg3[%c0_3, %c0_4] : memref<8x1xf32, #tpu.memory_space<vmem>>, vector<8x1xf32>
    %4 = vector.broadcast %3 : vector<8x1xf32> to vector<8x64xf32>
    %5 = arith.mulf %2, %4 : vector<8x64xf32>
    %c0_5 = arith.constant 0 : index
    %c0_6 = arith.constant 0 : index
    %6 = vector.load %arg4[%c0_5, %c0_6] : memref<8x1xf32, #tpu.memory_space<vmem>>, vector<8x1xf32>
    %7 = vector.broadcast %6 : vector<8x1xf32> to vector<8x64xf32>
    %8 = arith.addf %5, %7 : vector<8x64xf32>
    %c0_7 = arith.constant 0 : index
    %c0_8 = arith.constant 0 : index
    %9 = vector.load %arg5[%c0_7, %c0_8] : memref<8x64xf32, #tpu.memory_space<vmem>>, vector<8x64xf32>
    tpu.vector_store %arg5[%c0_7, %c0_8], %8 {strides = array<i32>} : memref<8x64xf32, #tpu.memory_space<vmem>>, vector<8x64xf32>,
    return
  }
  func.func @transform_0(%arg0: i32) -> (i32, i32) {
    %c0_i32 = arith.constant 0 : i32
    %c0_i32_0 = arith.constant 0 : i32
    return %arg0, %c0_i32 : i32, i32
  }
  func.func @transform_1(%arg0: i32) -> (i32, i32) {
    %c0_i32 = arith.constant 0 : i32
    %c0_i32_0 = arith.constant 0 : i32
    %c0_i32_1 = arith.constant 0 : i32
    return %c0_i32, %c0_i32_0 : i32, i32
  }
  func.func @transform_2(%arg0: i32) -> (i32, i32) {
    %c0_i32 = arith.constant 0 : i32
    %c0_i32_0 = arith.constant 0 : i32
    return %arg0, %c0_i32 : i32, i32
  }
  func.func @transform_3(%arg0: i32) -> (i32, i32) {
    %c0_i32 = arith.constant 0 : i32
    %c0_i32_0 = arith.constant 0 : i32
    return %arg0, %c0_i32 : i32, i32
  }
  func.func @transform_4(%arg0: i32) -> (i32, i32) {
    %c0_i32 = arith.constant 0 : i32
    %c0_i32_0 = arith.constant 0 : i32
    return %arg0, %c0_i32 : i32, i32
  }
}

</mosaic_0001>

<bundles_post_ra>
// kernel: tile.1
= control target key start
LH: loop header
LB: loop body
LE: loop exit
PB: predicated region body
PF: predicated region fallthrough
CT: control target
= control target key end

     0   :  { %s35_s8 = smov 125   ;;  %vm8_vm0 = vcmask 7168   ;;  %s36_s11 = smov 126   ;;  %s62_s0 = inlined_call_operand.vmem [shape: f32[2,4], index: 0, kind: input, shape index: {}]   ;;  %s63_s1 = inlined_call_operand.vmem [shape: f32[8,1], index: 1, kind: output, shape index: {}]  }
   0x1   :  { %v5_v0 = vld [vmem:[%s62_s0] sm:$0x3]  ;;  %s34_s0 = smov 127  }
   0x2   :  { %6 = vst [vmem:[#allocation0] sm:$0x3] %v5_v0 }
   0x9   :  { %v10_v1 = vld [vmem:[#allocation0] sm:$0x3]  }
   0xa   :  { %v22_v2 = vld [vmem:[#allocation0] sm:$0x3]   ;;  %11 = vrot.lane.b32.xlu0 %v10_v1, %s34_s0 }
   0xb   :  { %23 = vrot.lane.b32.xlu1 %v22_v2, %s35_s8  ;;  %v7_v3 = vld [vmem:[#allocation0] sm:$0x3]  }
   0xc   :  { %v16_v4 = vld [vmem:[#allocation0] sm:$0x3]   ;;  %9 = vst.msk [vmem:[%s63_s1] ss:$4 sm:$0x3] %vm8_vm0, %v7_v3  }
   0xe   :  { %17 = vrot.lane.b32.xlu0 %v16_v4, %s36_s11 }
  0x7c   :  { %v12_v5 = vpop.permute.xlu0 %11  }
  0x7d   :  { %v24_v6 = vpop.permute.xlu1 %23   ;;  %28 = vst.msk [vmem:[%s63_s1 + $0x1] ss:$4 sm:$0x3] %vm8_vm0, %v12_v5  }
  0x7e   :  { %30 = vst.msk [vmem:[%s63_s1 + $0x3] ss:$4 sm:$0x3] %vm8_vm0, %v24_v6  }
  0x80   :  { %v18_v7 = vpop.permute.xlu0 %17  }
  0x81   :  { %29 = vst.msk [vmem:[%s63_s1 + $0x2] ss:$4 sm:$0x3] %vm8_vm0, %v18_v7  }

// kernel: tile.13
= control target key start
LH: loop header
LB: loop body
LE: loop exit
PB: predicated region body
PF: predicated region fallthrough
CT: control target
= control target key end

     0   :  { %s22_s0 = inlined_call_operand.vmem [shape: f32[4], index: 0, kind: input, shape index: {}]   ;;  %s23_s1 = inlined_call_operand.vmem [shape: f32[2,4], index: 1, kind: output, shape index: {}]  }
   0x1   :  { %v4_v0 = vld [vmem:[%s22_s0] ss:$0 sm:$0xff] }
   0x2   :  { %5 = vst [vmem:[%s23_s1] sm:$0x3] %v4_v0 }

// kernel: subsampling_forward.1
= control target key start
LH: loop header
LB: loop body
LE: loop exit
PB: predicated region body
PF: predicated region fallthrough
CT: control target
= control target key end

     0   :  { %9 = vsyncpa [#allocation3], 0  ;;  %s218_s15 = smov [#allocation2]   ;;  %s265_s0 = inlined_call_operand.vmem [shape: f32[8,256], index: 0, kind: input, shape index: {}]   ;;  %s266_s1 = inlined_call_operand.hbm [shape: f32[256,64], index: 1, kind: input, shape index: {}]   ;;  %s267_s2 = inlined_call_operand.vmem [shape: f32[8,1], index: 2, kind: input, shape index: {}]   ;;  %s268_s3 = inlined_call_operand.vmem [shape: f32[8,1], index: 3, kind: input, shape index: {}]   ;;  %s269_s4 = inlined_call_operand.vmem [shape: f32[8,64], index: 4, kind: output, shape index: {}]  }
   0x1   :  { %s17_s16 = sshll.u32 %s218_s15, 4  ;;  %s18_s16 = int_to_ptr.vmem [resolvable:$true] %s17_s16 }
   0x2   :  { %s204_s17 = scalar_lea.vmem %s18_s16, 4096  ;;  %p209_p1 = scmp.lt.s32.totalorder %s18_s16, %s18_s16 }
   0x3   :  { %p205_p0 = scmp.ne.s32.totalorder %s18_s16, %s204_s17  ;;  %p210_p2 = scmp.lt.s32.totalorder %s204_s17, %s204_s17 }
   0x5   :  { %p211_p3 = por %p210_p2, %p209_p1 }
   0x7   :  { %p212_p4 = pnand %p211_p3, %p205_p0 }
   0x9   :  { %215 = shalt.err (!%p212_p4)
}
   0xa   :  { %s219_s18 = smov 128   ;;  %s220_s19 = smov 8  }
   0xb   :  { %23 = dma.hbm_to_vmem [thread:$0]  %s266_s1, 4096, %s18_s16, [#allocation3], %s219_s18, %s219_s18, %s220_s19  }
   0xc   :  { %216 = dma.done.wait [#allocation3], 4096  }
   0xd   :  { %217 = vsyncadd [#allocation3], 4294963200  ;;  %v221_v0 = vmov 0   ;;  %v64_v1 = vld [vmem:[#allocation2 + $0xf8] sm:$0xff]  ;;  %v63_v3 = vld [vmem:[#allocation2 + $0xf0] sm:$0xff]  ;;  %vm149_vm0 = vcmask 523264  }
   0xe   :  { %195 = vset.pattern.permute.xlu0 %v221_v0  ;;  %v48_v2 = vld [vmem:[#allocation2 + $0x78] sm:$0xff]  ;;  %156 = vmatprep.subr.mxu0 %v64_v1  ;;  %v47_v4 = vld [vmem:[#allocation2 + $0x70] sm:$0xff]  ;;  %v62_v5 = vld [vmem:[#allocation2 + $0xe8] sm:$0xff] }
   0xf   :  { %157 = vmatpush3.msra.mxu0 %v48_v2  ;;  %v46_v6 = vld [vmem:[#allocation2 + $0x68] sm:$0xff]  ;;  %v61_v7 = vld [vmem:[#allocation2 + $0xe0] sm:$0xff]  ;;  %v60_v9 = vld [vmem:[#allocation2 + $0xd8] sm:$0xff] }
  0x10   :  { %158 = vmatprep.subr.mxu0 %v63_v3  ;;  %v45_v8 = vld [vmem:[#allocation2 + $0x60] sm:$0xff]  ;;  %v44_v10 = vld [vmem:[#allocation2 + $0x58] sm:$0xff]  ;;  %v59_v11 = vld [vmem:[#allocation2 + $0xd0] sm:$0xff] }
  0x11   :  { %159 = vmatpush3.msra.mxu0 %v47_v4  ;;  %v43_v12 = vld [vmem:[#allocation2 + $0x50] sm:$0xff]  ;;  %v58_v13 = vld [vmem:[#allocation2 + $0xc8] sm:$0xff]  ;;  %v135_v16 = vld [vmem:[%s267_s2] sm:$0xff] }
  0x12   :  { %160 = vmatprep.subr.mxu0 %v62_v5  ;;  %v32_v14 = vld [vmem:[%s265_s0 + $0x8] sm:$0xff]  ;;  %v57_v17 = vld [vmem:[#allocation2 + $0xc0] sm:$0xff]  ;;  %138 = vperm.xlu0 %195, %v135_v16   ;;  %v56_v20 = vld [vmem:[#allocation2 + $0xb8] sm:$0xff] }
  0x13   :  { %161 = vmatpush3.msra.mxu0 %v46_v6  ;;  %v42_v15 = vld [vmem:[#allocation2 + $0x48] sm:$0xff]  ;;  %129 = vmatprep.mubr.f32.mxu0 %v32_v14  ;;  %v41_v18 = vld [vmem:[#allocation2 + $0x40] sm:$0xff]  ;;  %v40_v21 = vld [vmem:[#allocation2 + $0x38] sm:$0xff] }
  0x14   :  { %162 = vmatprep.subr.mxu0 %v61_v7  ;;  %v142_v19 = vld [vmem:[%s268_s3] sm:$0xff]  ;;  %v55_v22 = vld [vmem:[#allocation2 + $0xb0] sm:$0xff]  ;;  %v54_v24 = vld [vmem:[#allocation2 + $0xa8] sm:$0xff] }
  0x15   :  { %163 = vmatpush3.msra.mxu0 %v45_v8  ;;  %v39_v23 = vld [vmem:[#allocation2 + $0x30] sm:$0xff]  ;;  %v38_v25 = vld [vmem:[#allocation2 + $0x28] sm:$0xff]  ;;  %v53_v26 = vld [vmem:[#allocation2 + $0xa0] sm:$0xff] }
  0x16   :  { %164 = vmatprep.subr.mxu0 %v60_v9  ;;  %145 = vperm.xlu0 %195, %v142_v19   ;;  %v37_v27 = vld [vmem:[#allocation2 + $0x20] sm:$0xff]  ;;  %v52_v28 = vld [vmem:[#allocation2 + $0x98] sm:$0xff]  ;;  %v51_v30 = vld [vmem:[#allocation2 + $0x90] sm:$0xff] }
  0x17   :  { %165 = vmatpush3.msra.mxu0 %v44_v10  ;;  %v36_v29 = vld [vmem:[#allocation2 + $0x18] sm:$0xff]  ;;  %v35_v31 = vld [vmem:[#allocation2 + $0x10] sm:$0xff]  ;;  %v50_v32 = vld [vmem:[#allocation2 + $0x88] sm:$0xff] }
  0x18   :  { %166 = vmatprep.subr.mxu0 %v59_v11  ;;  %v34_v33 = vld [vmem:[#allocation2 + $0x8] sm:$0xff]  ;;  %v49_v34 = vld [vmem:[#allocation2 + $0x80] sm:$0xff] }
  0x19   :  { %167 = vmatpush3.msra.mxu0 %v43_v12  ;;  %v33_v35 = vld [vmem:[#allocation2] sm:$0xff] }
  0x1a   :  { %168 = vmatprep.subr.mxu0 %v58_v13  ;;  %v31_v36 = vld [vmem:[%s265_s0] sm:$0xff] }
  0x1b   :  { %169 = vmatpush3.msra.mxu0 %v42_v15 }
  0x1c   :  { %170 = vmatprep.subr.mxu0 %v57_v17 }
  0x1d   :  { %171 = vmatpush3.msra.mxu0 %v41_v18 }
  0x1e   :  { %172 = vmatprep.subr.mxu0 %v56_v20 }
  0x1f   :  { %173 = vmatpush3.msra.mxu0 %v40_v21 }
  0x20   :  { %174 = vmatprep.subr.mxu0 %v55_v22 }
  0x21   :  { %175 = vmatpush3.msra.mxu0 %v39_v23 }
  0x22   :  { %176 = vmatprep.subr.mxu0 %v54_v24 }
  0x23   :  { %177 = vmatpush3.msra.mxu0 %v38_v25 }
  0x24   :  { %178 = vmatprep.subr.mxu0 %v53_v26 }
  0x25   :  { %179 = vmatpush3.msra.mxu0 %v37_v27 }
  0x26   :  { %180 = vmatprep.subr.mxu0 %v52_v28 }
  0x27   :  { %181 = vmatpush3.msra.mxu0 %v36_v29 }
  0x28   :  { %182 = vmatprep.subr.mxu0 %v51_v30 }
  0x29   :  { %183 = vmatpush3.msra.mxu0 %v35_v31 }
  0x2a   :  { %184 = vmatprep.subr.mxu0 %v50_v32 }
  0x2b   :  { %185 = vmatpush3.msra.mxu0 %v34_v33 }
  0x2c   :  { %186 = vmatprep.subr.mxu0 %v49_v34 }
  0x2d   :  { %187 = vmatpush3.msra.mxu0 %v33_v35 }
  0x2e   :  { %130 = vmatmul.mubr.f32.vlgmr.msra.gmra.mxu0 %v31_v36 }
  0x8d   :  { %v139_v37 = vpop.permute.xlu0 %138 }
  0x91   :  { %v146_v42 = vpop.permute.xlu0 %145 }
  0xee   :  { %v188_v38 = vpop.f32.mrf.mxu0 }
  0xf0   :  { %v189_v39 = vpop.f32.mrf.mxu0 }
  0xf1   :  { %v190_v40 = vadd.f32 %v189_v39, %v188_v38 }
  0xf3   :  { %v141_v41 = vmul.f32 %v190_v40, %v139_v37 }
  0xf5   :  { %v148_v43 = vadd.f32 %v146_v42, %v141_v41 }
  0xf7   :  { %150 = vst.msk [vmem:[%s269_s4] sm:$0xff] %vm149_vm0, %v148_v43 }
  0xf8   :  { %155 = vsyncpa [#allocation3], 1 }

</bundles_post_ra>
